<compile_context>
chip_gen: v7x
topology: tpu7x:2x2x1
jax: 0.10.0
libtpu: 0.0.40
codegen_flags: <defaults>
</compile_context>

<pallas_src>
import functools
import math

import numpy as np

import jax
import jax.numpy as jnp
from jax import lax
from jax.experimental import pallas as pl
from jax.experimental.pallas import tpu as pltpu


# ----------------------------------------------------------------------------
# Small helpers
# ----------------------------------------------------------------------------
def _round_up(x, m):
    return ((x + m - 1) // m) * m


def _itemsize(dt):
    return int(np.dtype(dt).itemsize)


def _vmem_budget_bytes():
    """~75% of physical VMEM: v5e/v6e -> ~96 MiB, v7x (64 MiB/TC) -> ~48 MiB."""
    cap = 128 * 1024 * 1024
    try:
        info = pltpu.get_tpu_info()
        cap = int(getattr(info, "vmem_capacity_bytes", cap)) or cap
    except Exception:
        pass
    return int(min(cap * 3 // 4, 100 * 1024 * 1024))


# ----------------------------------------------------------------------------
# Capability probes (run once; keep the main kernel robust across runtimes)
# ----------------------------------------------------------------------------
_BUFFERED1_OK = None


def _buffered_single_ok():
    """Probe pl.Buffered(1) (single-buffered grid-invariant inputs) support."""
    global _BUFFERED1_OK
    if _BUFFERED1_OK is not None:
        return _BUFFERED1_OK
    try:
        def k(x_ref, o_ref):
            o_ref[...] = x_ref[...] + 1.0

        x = jnp.zeros((8, 128), jnp.float32)
        out = pl.pallas_call(
            k,
            out_shape=jax.ShapeDtypeStruct((8, 128), jnp.float32),
            grid=(2,),
            in_specs=[pl.BlockSpec((8, 128), lambda i: (0, 0),
                                   pipeline_mode=pl.Buffered(1))],
            out_specs=pl.BlockSpec((8, 128), lambda i: (0, 0)),
        )(x)
        _BUFFERED1_OK = bool(np.allclose(np.asarray(jax.block_until_ready(out)), 1.0))
    except Exception:
        _BUFFERED1_OK = False
    return _BUFFERED1_OK


def _skew_with_roll(rel, tq, Tg, Wp):
    """out[i, j] = rel[i, j + (tq - 1 - i)] via one XLU stride-roll + static slice."""
    shift = (Wp - (tq - 1)) % Wp
    rolled = pltpu.roll(rel, shift, 1, stride=1, stride_axis=0)
    return rolled[:, :Tg]


def _skew_unrolled(rel, tq, Tg):
    """Fallback: per-row static window slices (correct-by-construction)."""
    rows = [rel[i:i + 1, tq - 1 - i: tq - 1 - i + Tg] for i in range(tq)]
    return rows[0] if len(rows) == 1 else jnp.concatenate(rows, axis=0)


_ROLL_SKEW_OK = {}


def _roll_skew_supported(tq, Tg, Wp):
    """Verify the stride-roll skew (lowering + sign convention) at the exact tile
    shape used by the kernel; fall back to per-row slices otherwise."""
    key = (tq, Tg, Wp)
    if key in _ROLL_SKEW_OK:
        return _ROLL_SKEW_OK[key]
    if tq <= 1:
        _ROLL_SKEW_OK[key] = False
        return False
    try:
        x = jnp.arange(tq * Wp, dtype=jnp.float32).reshape(tq, Wp)

        def probe(x_ref, o_ref):
            o_ref[...] = _skew_with_roll(x_ref[...], tq, Tg, Wp)

        got = pl.pallas_call(
            probe, out_shape=jax.ShapeDtypeStruct((tq, Tg), jnp.float32))(x)
        got = np.asarray(jax.block_until_ready(got))
        xs = np.asarray(x)
        want = np.stack([xs[i, tq - 1 - i: tq - 1 - i + Tg] for i in range(tq)])
        ok = bool(np.array_equal(got, want))
    except Exception:
        ok = False
    _ROLL_SKEW_OK[key] = ok
    return ok


# ----------------------------------------------------------------------------
# Tiled linear projection kernel: y = x @ Wt + b  (Wt pre-transposed to (K, N))
# ----------------------------------------------------------------------------
def _linear_kernel(x_ref, w_ref, b_ref, o_ref, acc_ref, *, compute_dtype):
    k = pl.program_id(2)

    @pl.when(k == 0)
    def _():
        acc_ref[...] = jnp.zeros_like(acc_ref)

    acc_ref[...] += jnp.dot(x_ref[...].astype(compute_dtype),
                            w_ref[...].astype(compute_dtype),
                            preferred_element_type=jnp.float32)

    @pl.when(k == pl.num_programs(2) - 1)
    def _():
        o_ref[...] = (acc_ref[...] + b_ref[...].astype(jnp.float32)).astype(o_ref.dtype)


def _pick_tile(dim, candidates):
    for c in candidates:
        if dim >= c and dim % c == 0:
            return c
    return dim


def pallas_linear(x2d, w_t, b_row, *, out_dtype=jnp.float32,
                  compute_dtype=jnp.float32, vmem_limit=None):
    """x2d: (M, K), w_t: (K, N) pre-transposed weight, b_row: (1, N)."""
    M, K = x2d.shape
    K2, N = w_t.shape
    assert K == K2
    tm = _pick_tile(M, (2048, 1024, 512, 256, 128, 64, 32, 16, 8))
    tn = _pick_tile(N, (512, 256, 128))
    tk = _pick_tile(K, (512, 256, 128))
    grid = (M // tm, N // tn, K // tk)
    if vmem_limit is None:
        vmem_limit = _vmem_budget_bytes()
    cost = pl.CostEstimate(
        flops=int(2 * M * N * K), transcendentals=0,
        bytes_accessed=int(4 * (M * K + K * N + N) + _itemsize(out_dtype) * M * N))
    return pl.pallas_call(
        functools.partial(_linear_kernel, compute_dtype=compute_dtype),
        out_shape=jax.ShapeDtypeStruct((M, N), out_dtype),
        grid=grid,
        in_specs=[
            pl.BlockSpec((tm, tk), lambda i, j, k: (i, k)),
            pl.BlockSpec((tk, tn), lambda i, j, k: (k, j)),
            pl.BlockSpec((1, tn), lambda i, j, k: (0, j)),
        ],
        out_specs=pl.BlockSpec((tm, tn), lambda i, j, k: (i, j)),
        scratch_shapes=[pltpu.VMEM((tm, tn), jnp.float32)],
        compiler_params=pltpu.CompilerParams(
            dimension_semantics=("parallel", "parallel", "arbitrary"),
            vmem_limit_bytes=int(vmem_limit)),
        cost_estimate=cost,
    )(x2d, w_t, b_row)


# ----------------------------------------------------------------------------
# Grouped relative-position attention kernel: grid (B, Tg // tq), heads fused
# ----------------------------------------------------------------------------
def _attn_kernel(q_ref, k_ref, v_ref, e_ref, u_ref, vb_ref, o_ref, *rest,
                 H, dh, Tg, tq, Wp, scale, compute_dtype, with_weights, use_roll):
    aw_ref = rest[0] if with_weights else None

    qi = pl.program_id(1)
    win_start = Tg - tq - qi * tq            # E-window start for this query tile
    if Tg % 8 == 0 and tq % 8 == 0:
        win_start = pl.multiple_of(win_start, 8)

    outs = []
    for h in range(H):                        # heads unrolled (H is small)
        lo = h * dh
        q_h = q_ref[0, :, lo:lo + dh].astype(jnp.float32)            # (tq, dh)
        u_h = u_ref[:, lo:lo + dh].astype(jnp.float32)               # (1, dh)
        vb_h = vb_ref[:, lo:lo + dh].astype(jnp.float32)             # (1, dh)
        # Fold 1/sqrt(dh) into the small query tensors (not the (tq, Tg) scores).
        qu_h = ((q_h + u_h) * scale).astype(compute_dtype)
        qv_h = ((q_h + vb_h) * scale).astype(compute_dtype)
        k_h = k_ref[0, :, lo:lo + dh].astype(compute_dtype)          # (Tg, dh)
        v_h = v_ref[0, :, lo:lo + dh].astype(compute_dtype)          # (Tg, dh)
        e_h = e_ref[pl.ds(win_start, Wp), lo:lo + dh].astype(compute_dtype)  # (Wp, dh)

        # Content and relative scores: MXU matmuls with f32 accumulation.
        sk = lax.dot_general(qu_h, k_h, (((1,), (1,)), ((), ())),
                             preferred_element_type=jnp.float32)      # (tq, Tg)
        rel = lax.dot_general(qv_h, e_h, (((1,), (1,)), ((), ())),
                              preferred_element_type=jnp.float32)     # (tq, Wp)

        # rel -> abs skew (non-causal), accumulated straight onto content scores;
        # within a tile the per-row offset is (tq - 1 - i), independent of the tile.
        if use_roll:
            s = sk + _skew_with_roll(rel, tq, Tg, Wp)
        else:
            s = sk + _skew_unrolled(rel, tq, Tg)

        # Softmax in f32; normalisation via EUP reciprocal (free slot next to exp).
        m = jnp.max(s, axis=-1, keepdims=True)
        p = jnp.exp(s - m)
        denom = jnp.sum(p, axis=-1, keepdims=True)
        att = p * pl.reciprocal(denom, approx=True)

        out_h = jnp.dot(att.astype(compute_dtype), v_h,
                        preferred_element_type=jnp.float32)           # (tq, dh)
        outs.append(out_h)
        if with_weights:
            aw_ref[0, h] = att.astype(aw_ref.dtype)

    # Single lane-dense store of the whole (tq, H*dh) output slab.
    o_ref[0] = jnp.concatenate(outs, axis=-1).astype(o_ref.dtype)


def _choose_attention_tiling(Tg, GD, H, proj_bytes, with_weights, w_bytes, budget):
    """Pick the query-tile size / padded relative width under the VMEM budget."""
    cands = [c for c in (256, 128, 64, 32, 16, 8) if c < Tg and Tg % c == 0]
    if Tg <= 256:
        cands = [Tg] + cands
    if not cands:
        cands = [Tg]
    e_bufs = 1 if _buffered_single_ok() else 2
    chosen = None
    for tq in cands:
        Wp = Tg + tq
        if Wp >= 128:
            Wp = _round_up(Wp, 128)            # lane-aligned relative axis
        L2p = Tg - tq + Wp
        est = (2 * tq * GD * proj_bytes        # q block (double buffered)
               + 4 * Tg * GD * proj_bytes      # k + v blocks (double buffered)
               + e_bufs * L2p * GD * proj_bytes
               + 2 * tq * GD * proj_bytes      # output slab block
               + (2 * H * tq * Tg * w_bytes if with_weights else 0)
               + 6 * tq * max(Tg, Wp) * 4      # in-kernel f32 score temporaries
               + tq * GD * 4)
        chosen = (tq, Wp, L2p)
        if est <= budget:
            break
    # TODO(synk): very large Tg also needs key-axis tiling + online softmax
    #             (k/v blocks above are full-Tg); not required for these sizes.
    return chosen


def pallas_grouped_attention(q_slab, k_slab, v_slab, e_slab, u_row, vb_row, *,
                             num_heads, dim_head, tq, Wp, compute_dtype,
                             return_weights, weights_dtype, out_dtype, vmem_limit):
    B, Tg, GD = q_slab.shape
    H, dh = num_heads, dim_head
    L2p = e_slab.shape[0]
    nq = Tg // tq
    scale = 1.0 / math.sqrt(dh)
    use_roll = _roll_skew_supported(tq, Tg, Wp)

    kernel = functools.partial(
        _attn_kernel, H=H, dh=dh, Tg=Tg, tq=tq, Wp=Wp, scale=scale,
        compute_dtype=compute_dtype, with_weights=return_weights, use_roll=use_roll)

    out_shapes = [jax.ShapeDtypeStruct((B, Tg, GD), out_dtype)]
    out_specs = [pl.BlockSpec((1, tq, GD), lambda b, qi: (b, qi, 0))]
    if return_weights:
        out_shapes.append(jax.ShapeDtypeStruct((B, H, Tg, Tg), weights_dtype))
        out_specs.append(pl.BlockSpec((1, H, tq, Tg), lambda b, qi: (b, 0, qi, 0)))

    # Grid-invariant operands (constant index maps -> VMEM-resident); single
    # buffer them when pl.Buffered(1) is available to free VMEM headroom.
    const_kw = {"pipeline_mode": pl.Buffered(1)} if _buffered_single_ok() else {}
    in_specs = [
        pl.BlockSpec((1, tq, GD), lambda b, qi: (b, qi, 0)),
        pl.BlockSpec((1, Tg, GD), lambda b, qi: (b, 0, 0)),
        pl.BlockSpec((1, Tg, GD), lambda b, qi: (b, 0, 0)),
        pl.BlockSpec((L2p, GD), lambda b, qi: (0, 0), **const_kw),
        pl.BlockSpec((1, GD), lambda b, qi: (0, 0), **const_kw),
        pl.BlockSpec((1, GD), lambda b, qi: (0, 0), **const_kw),
    ]

    pb, wb, ob = _itemsize(q_slab.dtype), _itemsize(weights_dtype), _itemsize(out_dtype)
    flops = 2 * B * H * Tg * dh * (2 * Tg + Wp)
    bytes_acc = (pb * (3 * B * Tg * GD + L2p * GD) + ob * B * Tg * GD
                 + (wb * B * H * Tg * Tg if return_weights else 0) + 8 * GD)
    cost = pl.CostEstimate(flops=int(flops), transcendentals=int(B * H * Tg * Tg),
                           bytes_accessed=int(bytes_acc))

    results = pl.pallas_call(
        kernel,
        out_shape=tuple(out_shapes),
        grid=(B, nq),
        in_specs=in_specs,
        out_specs=tuple(out_specs),
        compiler_params=pltpu.CompilerParams(
            dimension_semantics=("parallel", "parallel"),
            vmem_limit_bytes=int(vmem_limit)),
        cost_estimate=cost,
    )(q_slab, k_slab, v_slab, e_slab, u_row, vb_row)

    if return_weights:
        out_slab, att_w = results
        return out_slab, att_w
    (out_slab,) = results
    return out_slab, None


# ----------------------------------------------------------------------------
# GroupedRelativeSinusoidalPositionalEncoding (non-causal), returned pre-sliced
# ----------------------------------------------------------------------------
def grouped_rel_pos_encoding(max_len, dim_model, group_size, seq_len, hidden_len=0):
    gmod = group_size % 2
    pos_left = jnp.arange(max_len - 1, gmod - 1, -1, dtype=jnp.float32)
    pos_right = jnp.arange(0, -max_len, -1, dtype=jnp.float32)
    pos = jnp.concatenate([pos_left, pos_right])[:, None]
    denom = 10000.0 ** (
        2.0 * jnp.arange(0, dim_model // 2, dtype=jnp.float32)[None, :] / dim_model)
    angles = pos / denom
    pe = jnp.zeros((2 * max_len - gmod, dim_model), jnp.float32)
    pe = pe.at[:, 0::2].set(jnp.sin(angles))
    pe = pe.at[:, 1::2].set(jnp.cos(angles))
    start = max_len - seq_len + group_size // 2 - hidden_len
    end = max_len - gmod + seq_len - group_size // 2
    return pe[start:end]  # (2*seq_len - group_size, D)


# ----------------------------------------------------------------------------
# Module forward (mask=None, hidden=None, non-causal, T % group_size == 0)
# ----------------------------------------------------------------------------
def grouped_relpos_mhsa_forward(params, query, key, value, num_heads, group_size,
                                max_pos, *, compute_dtype=jnp.float32,
                                return_weights=True, weights_dtype=None):
    B, T, D = query.shape
    G, H = group_size, num_heads
    assert T % G == 0, "padding path not implemented; T must be a multiple of group_size"
    # TODO(synk): mask, causal branch, streaming hidden (KV-cache) concat and the
    #             T % group_size padding path of the PyTorch module are not implemented.
    dh = G * D // H
    Tg = T // G
    GD = G * D
    proj_dtype = jnp.bfloat16 if compute_dtype == jnp.bfloat16 else jnp.float32
    if weights_dtype is None:
        weights_dtype = proj_dtype
    budget = _vmem_budget_bytes()

    x2d = query.reshape(B * T, D)
    if (query is key) and (key is value):
        # Fused Q/K/V projection: single x read, lane-dense (D, 3D) weight slab.
        w_qkv = jnp.concatenate([params['WqT'], params['WkT'], params['WvT']], axis=1)
        b_qkv = jnp.concatenate([params['bq'], params['bk'], params['bv']], axis=1)
        qkv = pallas_linear(x2d, w_qkv, b_qkv, out_dtype=proj_dtype,
                            compute_dtype=compute_dtype, vmem_limit=budget)
        q2, k2, v2 = qkv[:, :D], qkv[:, D:2 * D], qkv[:, 2 * D:]
    else:
        q2 = pallas_linear(x2d, params['WqT'], params['bq'], out_dtype=proj_dtype,
                           compute_dtype=compute_dtype, vmem_limit=budget)
        k2 = pallas_linear(key.reshape(B * T, D), params['WkT'], params['bk'],
                           out_dtype=proj_dtype, compute_dtype=compute_dtype,
                           vmem_limit=budget)
        v2 = pallas_linear(value.reshape(B * T, D), params['WvT'], params['bv'],
                           out_dtype=proj_dtype, compute_dtype=compute_dtype,
                           vmem_limit=budget)
    hidden = {'key': k2.reshape(B, T, D), 'value': v2.reshape(B, T, D)}

    tq, Wp, L2p = _choose_attention_tiling(
        Tg, GD, H, _itemsize(proj_dtype), return_weights, _itemsize(weights_dtype),
        budget)

    # Grouped-head slab layout (B, Tg, G*D): head h occupies lanes [h*dh, (h+1)*dh).
    q_slab = q2.reshape(B, Tg, GD)
    k_slab = k2.reshape(B, Tg, GD)
    v_slab = v2.reshape(B, Tg, GD)

    # Relative positional encodings, projected; rows padded to the lane-friendly L2p.
    R = grouped_rel_pos_encoding(max_pos, D, G, T, hidden_len=0)       # (2T - G, D)
    E = pallas_linear(R, params['WpT'], params['bp'], out_dtype=proj_dtype,
                      compute_dtype=compute_dtype, vmem_limit=budget)
    e_slab = E.reshape(2 * Tg - 1, GD)
    e_slab = jnp.pad(e_slab, ((0, L2p - (2 * Tg - 1)), (0, 0)))

    u_row = jnp.tile(params['u'], G)[None, :]                           # (1, G*D)
    vb_row = jnp.tile(params['v'], G)[None, :]

    out_slab, att_w = pallas_grouped_attention(
        q_slab, k_slab, v_slab, e_slab, u_row, vb_row,
        num_heads=H, dim_head=dh, tq=tq, Wp=Wp,
        compute_dtype=compute_dtype, return_weights=return_weights,
        weights_dtype=weights_dtype, out_dtype=proj_dtype, vmem_limit=budget)

    # TODO(synk): fusing the output projection into the attention epilogue needs an
    #             in-kernel (tq, G*D) -> (tq*G, D) relayout (or a block-diag Wo);
    #             kept as a separate tiled matmul for robustness.
    out = pallas_linear(out_slab.reshape(B * T, D), params['WoT'], params['bo'],
                        out_dtype=jnp.float32, compute_dtype=compute_dtype,
                        vmem_limit=budget)
    return out.reshape(B, T, D), att_w, hidden


# ----------------------------------------------------------------------------
# Pure-JAX reference (mirrors the torch forward, incl. pad/reshape rel_to_abs)
# ----------------------------------------------------------------------------
def reference_forward(params, query, key, value, num_heads, group_size, max_pos):
    B, T, D = query.shape
    G, H = group_size, num_heads
    dh = G * D // H
    Tg = T // G
    q = query @ params['WqT'] + params['bq']
    k = key @ params['WkT'] + params['bk']
    v = value @ params['WvT'] + params['bv']
    Qu = q + params['u']
    Qv = q + params['v']
    R = grouped_rel_pos_encoding(max_pos, D, G, T)
    E = R @ params['WpT'] + params['bp']
    E = jnp.broadcast_to(E[None], (B,) + E.shape)

    def heads(x):
        return x.reshape(B, -1, H, dh).transpose(0, 2, 1, 3)

    Qu, Qv, K, V, Eh = heads(Qu), heads(Qv), heads(k), heads(v), heads(E)
    sK = Qu @ jnp.swapaxes(K, 2, 3)
    rel = Qv @ jnp.swapaxes(Eh, 2, 3)                # (B, H, Tg, 2Tg-1)
    L1, L2 = Tg, 2 * Tg - 1
    x = jnp.pad(rel, ((0, 0), (0, 0), (0, 0), (0, 1)))
    x = x.reshape(B, H, -1)
    x = jnp.pad(x, ((0, 0), (0, 0), (0, L2 - L1)))
    x = x.reshape(B, H, 1 + L1, L2)
    sE = x[:, :, :L1, L1 - 1:]
    s = (sK + sE) / (dh ** 0.5)
    w = jax.nn.softmax(s, axis=-1)
    o = w @ V
    o = o.transpose(0, 2, 1, 3).reshape(B, T, D)
    o = o @ params['WoT'] + params['bo']
    return o, w


if __name__ == "__main__":
    B, T, D, H, G, MAXPOS = 2, 8, 32, 4, 2, 16

    root = jax.random.PRNGKey(0)
    ks = jax.random.split(root, 16)

    def xavier(kk, shape, fan_in, fan_out):
        lim = math.sqrt(6.0 / (fan_in + fan_out))
        return jax.random.uniform(kk, shape, jnp.float32, -lim, lim)

    # Weights stored pre-transposed ((Din, Dout)); biases stored as (1, Dout).
    params = {
        'WqT': xavier(ks[0], (D, D), D, D), 'bq': 0.1 * xavier(ks[1], (1, D), D, 1),
        'WkT': xavier(ks[2], (D, D), D, D), 'bk': 0.1 * xavier(ks[3], (1, D), D, 1),
        'WvT': xavier(ks[4], (D, D), D, D), 'bv': 0.1 * xavier(ks[5], (1, D), D, 1),
        'WpT': xavier(ks[6], (D, D), D, D), 'bp': 0.1 * xavier(ks[7], (1, D), D, 1),
        'WoT': xavier(ks[8], (D, D), D, D), 'bo': 0.1 * xavier(ks[9], (1, D), D, 1),
        'u': xavier(ks[10], (D,), D // H, H),
        'v': xavier(ks[11], (D,), D // H, H),
    }

    # Self-attention: the same tensor is used for query/key/value (exercises the
    # fused single-x-read QKV projection path).
    x = jax.random.normal(ks[12], (B, T, D), jnp.float32)

    # f32 path with attention weights (matches the module's outputs).
    out, att_w, hidden = grouped_relpos_mhsa_forward(
        params, x, x, x, num_heads=H, group_size=G, max_pos=MAXPOS)
    jax.block_until_ready(out)

    ref_out, ref_w = reference_forward(
        params, x, x, x, num_heads=H, group_size=G, max_pos=MAXPOS)

    assert out.shape == (B, T, D)
    assert att_w.shape == (B, H, T // G, T // G)
    max_err = float(jnp.max(jnp.abs(out - ref_out)))
    assert jnp.allclose(out, ref_out, atol=5e-3, rtol=5e-3), f"max abs err {max_err}"
    assert jnp.allclose(att_w, ref_w, atol=5e-3, rtol=5e-3)

    # bf16 MXU fast path (bf16 projections, no attention-weights HBM writeback).
    out_bf, aw_bf, _ = grouped_relpos_mhsa_forward(
        params, x, x, x, num_heads=H, group_size=G, max_pos=MAXPOS,
        compute_dtype=jnp.bfloat16, return_weights=False)
    jax.block_until_ready(out_bf)
    assert aw_bf is None
    assert out_bf.shape == (B, T, D)
    assert jnp.allclose(out_bf, ref_out, atol=0.2, rtol=0.1)

    print("KERNEL_OK")
</pallas_src>

<mosaic_0001>
module attributes {stable_mosaic.version = 11 : i64} {
  func.func @_linear_kernel(%arg0: i32, %arg1: i32, %arg2: i32, %arg3: memref<16x32xf32, #tpu.memory_space<vmem>>, %arg4: memref<32x96xf32, #tpu.memory_space<vmem>>, %arg5: memref<1x96xf32, #tpu.memory_space<vmem>>, %arg6: memref<16x96xf32, #tpu.memory_space<vmem>>, %arg7: memref<16x96xf32, #tpu.memory_space<vmem>>) attributes {dimension_semantics = [#tpu.dimension_semantics<parallel>, #tpu.dimension_semantics<parallel>, #tpu.dimension_semantics<arbitrary>], iteration_bounds = array<i64: 1, 1, 1>, scalar_prefetch = 0 : i64, scratch_operands = 1 : i64, tpu.core_type = #tpu.core_type<tc>, window_params = [{transform_indices = @transform_0, window_bounds = array<i64: 16, 32>}, {transform_indices = @transform_1, window_bounds = array<i64: 32, 96>}, {transform_indices = @transform_2, window_bounds = array<i64: 1, 96>}, {transform_indices = @transform_3, window_bounds = array<i64: 16, 96>}]} {
    %c0_i32 = arith.constant 0 : i32
    %0 = arith.cmpi eq, %arg2, %c0_i32 : i32
    %1 = arith.extui %0 : i1 to i32
    %c0_i32_0 = arith.constant 0 : i32
    %2 = arith.cmpi ne, %1, %c0_i32_0 : i32
    scf.if %2 {
      %cst_10 = arith.constant 0.000000e+00 : f32
      %12 = vector.broadcast %cst_10 : f32 to vector<16x96xf32>
      %c0_11 = arith.constant 0 : index
      %c0_12 = arith.constant 0 : index
      %13 = vector.load %arg7[%c0_11, %c0_12] : memref<16x96xf32, #tpu.memory_space<vmem>>, vector<16x96xf32>
      tpu.vector_store %arg7[%c0_11, %c0_12], %12 {strides = array<i32>} : memref<16x96xf32, #tpu.memory_space<vmem>>, vector<16x96xf32>,
    } else {
    }
    %c0 = arith.constant 0 : index
    %c0_1 = arith.constant 0 : index
    %3 = vector.load %arg7[%c0, %c0_1] : memref<16x96xf32, #tpu.memory_space<vmem>>, vector<16x96xf32>
    %c0_2 = arith.constant 0 : index
    %c0_3 = arith.constant 0 : index
    %4 = vector.load %arg3[%c0_2, %c0_3] : memref<16x32xf32, #tpu.memory_space<vmem>>, vector<16x32xf32>
    %c0_4 = arith.constant 0 : index
    %c0_5 = arith.constant 0 : index
    %5 = vector.load %arg4[%c0_4, %c0_5] : memref<32x96xf32, #tpu.memory_space<vmem>>, vector<32x96xf32>
    %cst = arith.constant dense<0.000000e+00> : vector<16x96xf32>
    %6 = tpu.matmul %4, %5, %cst {dimension_numbers = #tpu.dot_dimension_numbers<[1], [0], [0], [1], [0, 0, 1, 1], [], []>} : vector<16x32xf32>, vector<32x96xf32>, vector<16x96xf32> -> vector<16x96xf32>
    %7 = arith.addf %3, %6 : vector<16x96xf32>
    %c0_6 = arith.constant 0 : index
    %c0_7 = arith.constant 0 : index
    %8 = vector.load %arg7[%c0_6, %c0_7] : memref<16x96xf32, #tpu.memory_space<vmem>>, vector<16x96xf32>
    tpu.vector_store %arg7[%c0_6, %c0_7], %7 {strides = array<i32>} : memref<16x96xf32, #tpu.memory_space<vmem>>, vector<16x96xf32>,
    %c0_i32_8 = arith.constant 0 : i32
    %9 = arith.cmpi eq, %arg2, %c0_i32_8 : i32
    %10 = arith.extui %9 : i1 to i32
    %c0_i32_9 = arith.constant 0 : i32
    %11 = arith.cmpi ne, %10, %c0_i32_9 : i32
    scf.if %11 {
      %c0_10 = arith.constant 0 : index
      %c0_11 = arith.constant 0 : index
      %12 = vector.load %arg7[%c0_10, %c0_11] : memref<16x96xf32, #tpu.memory_space<vmem>>, vector<16x96xf32>
      %c0_12 = arith.constant 0 : index
      %c0_13 = arith.constant 0 : index
      %13 = vector.load %arg5[%c0_12, %c0_13] : memref<1x96xf32, #tpu.memory_space<vmem>>, vector<1x96xf32>
      %14 = vector.broadcast %13 : vector<1x96xf32> to vector<16x96xf32>
      %15 = arith.addf %12, %14 : vector<16x96xf32>
      %c0_14 = arith.constant 0 : index
      %c0_15 = arith.constant 0 : index
      %16 = vector.load %arg6[%c0_14, %c0_15] : memref<16x96xf32, #tpu.memory_space<vmem>>, vector<16x96xf32>
      tpu.vector_store %arg6[%c0_14, %c0_15], %15 {strides = array<i32>} : memref<16x96xf32, #tpu.memory_space<vmem>>, vector<16x96xf32>,
    } else {
    }
    return
  }
  func.func @transform_0(%arg0: i32, %arg1: i32, %arg2: i32) -> (i32, i32) {
    %c0_i32 = arith.constant 0 : i32
    return %arg0, %arg2 : i32, i32
  }
  func.func @transform_1(%arg0: i32, %arg1: i32, %arg2: i32) -> (i32, i32) {
    %c0_i32 = arith.constant 0 : i32
    return %arg2, %arg1 : i32, i32
  }
  func.func @transform_2(%arg0: i32, %arg1: i32, %arg2: i32) -> (i32, i32) {
    %c0_i32 = arith.constant 0 : i32
    %c0_i32_0 = arith.constant 0 : i32
    return %c0_i32, %arg1 : i32, i32
  }
  func.func @transform_3(%arg0: i32, %arg1: i32, %arg2: i32) -> (i32, i32) {
    %c0_i32 = arith.constant 0 : i32
    return %arg0, %arg1 : i32, i32
  }
}

</mosaic_0001>

<bundles_post_ra>
// kernel: tpu_custom_call.1
= control target key start
LH: loop header
LB: loop body
LE: loop exit
PB: predicated region body
PF: predicated region fallthrough
CT: control target
= control target key end

     0   :  { %8 = vsyncpa [#allocation4], 0  ;;  %s416_s0 = inlined_call_operand.hbm [shape: f32[16,32], index: 0, kind: input, shape index: {}]   ;;  %s417_s1 = inlined_call_operand.hbm [shape: f32[32,96], index: 1, kind: input, shape index: {}]   ;;  %s418_s2 = inlined_call_operand.hbm [shape: f32[1,96], index: 2, kind: input, shape index: {}]   ;;  %s419_s3 = inlined_call_operand.hbm [shape: f32[16,96], index: 3, kind: output, shape index: {}]  }
   0x1   :  { %9 = vsyncpa [#allocation7], 0 }
   0x2   :  { %10 = vsyncpa [#allocation5], 0  ;;  %s319_s12 = smov [#allocation6]   ;;  %s320_s14 = smov [#allocation3]  }
   0x3   :  { %s28_s13 = sshll.u32 %s319_s12, 4  ;;  %s16_s15 = sshll.u32 %s320_s14, 4  ;;  %s29_s13 = int_to_ptr.vmem [resolvable:$true] %s28_s13  ;;  %s346_s15 = int_to_ptr.vmem [resolvable:$true] %s16_s15 }
   0x4   :  { %s225_s18 = scalar_lea.hbm %s417_s1, 512 }
   0x5   :  { %p226_p0 = scmp.ne.s32.totalorder %s417_s1, %s225_s18  ;;  %p229_p1 = scmp.lt.u32.totalorder %s225_s18, %s417_s1 }
   0x7   :  { %p231_p2 = pnand %p229_p1, %p226_p0 }
   0x9   :  { %234 = shalt.err (!%p231_p2)
}
   0xa   :  { %s235_s23 = scalar_lea.vmem %s29_s13, 512  ;;  %p240_p4 = scmp.lt.s32.totalorder %s29_s13, %s29_s13 }
   0xb   :  { %p236_p3 = scmp.ne.s32.totalorder %s29_s13, %s235_s23  ;;  %p241_p5 = scmp.lt.s32.totalorder %s235_s23, %s235_s23 }
   0xd   :  { %p242_p6 = por %p241_p5, %p240_p4 }
   0xf   :  { %p243_p7 = pnand %p242_p6, %p236_p3 }
  0x11   :  { %246 = shalt.err (!%p243_p7)
}
  0x12   :  { %s321_s24 = smov 128   ;;  %s322_s25 = smov 8  }
  0x13   :  { %34 = dma.hbm_to_vmem [thread:$0]  %s417_s1, 512, %s29_s13, [#allocation7], %s321_s24, %s321_s24, %s322_s25  }
  0x14   :  { %s247_s30 = scalar_lea.hbm %s416_s0, 256 }
  0x15   :  { %p248_p8 = scmp.ne.s32.totalorder %s416_s0, %s247_s30  ;;  %p251_p9 = scmp.lt.u32.totalorder %s247_s30, %s416_s0 }
  0x17   :  { %p253_p10 = pnand %p251_p9, %p248_p8 }
  0x19   :  { %256 = shalt.err (!%p253_p10)
}
  0x1a   :  { %s257_s8 = scalar_lea.vmem %s346_s15, 256  ;;  %p262_p12 = scmp.lt.s32.totalorder %s346_s15, %s346_s15 }
  0x1b   :  { %p258_p11 = scmp.ne.s32.totalorder %s346_s15, %s257_s8  ;;  %p263_p13 = scmp.lt.s32.totalorder %s257_s8, %s257_s8 }
  0x1d   :  { %p264_p0 = por %p263_p13, %p262_p12 }
  0x1f   :  { %p265_p1 = pnand %p264_p0, %p258_p11 }
  0x21   :  { %268 = shalt.err (!%p265_p1)
}
  0x22   :  { %22 = dma.hbm_to_vmem [thread:$0]  %s416_s0, 256, %s346_s15, [#allocation4], %s321_s24, %s321_s24, %s322_s25  }
  0x23   :  { %s323_s10 = smov [#allocation8]   ;;  %s269_s14 = scalar_lea.hbm %s418_s2, 16 }
  0x24   :  { %s41_s11 = sshll.u32 %s323_s10, 4  ;;  %p270_p2 = scmp.ne.s32.totalorder %s418_s2, %s269_s14  ;;  %s42_s11 = int_to_ptr.vmem [resolvable:$true] %s41_s11 }
  0x25   :  { %p273_p3 = scmp.lt.u32.totalorder %s269_s14, %s418_s2 }
  0x27   :  { %p275_p4 = pnand %p273_p3, %p270_p2 }
  0x29   :  { %278 = shalt.err (!%p275_p4)
}
  0x2a   :  { %s279_s20 = scalar_lea.vmem %s42_s11, 16  ;;  %s283_s0 = scalar_lea.vmem %s42_s11, 32 }
  0x2b   :  { %p280_p5 = scmp.ne.s32.totalorder %s42_s11, %s279_s20  ;;  %p284_p6 = scmp.lt.s32.totalorder %s42_s11, %s42_s11 }
  0x2c   :  { %p285_p7 = scmp.lt.s32.totalorder %s283_s0, %s279_s20 }
  0x2e   :  { %p286_p8 = por %p285_p7, %p284_p6 }
  0x30   :  { %p287_p9 = pnand %p286_p8, %p280_p5 }
  0x32   :  { %290 = shalt.err (!%p287_p9)
}
  0x33   :  { %44 = dma.hbm_to_vmem [thread:$0]  %s418_s2, 16, %s42_s11, [#allocation7]  }
  0x34   :  { %313 = dma.done.wait [#allocation4], 256  }
  0x35   :  { %314 = vsyncadd [#allocation4], 4294967040 }
  0x36   :  { %315 = dma.done.wait [#allocation7], 528  }
  0x37   :  { %316 = vsyncadd [#allocation7], 4294966768  ;;  %vm58_vm0 = vcmask 785408   ;;  %v324_v0 = vmov 0.0   ;;  %vm69_vm1 = vcmask 261120   ;;  %v65_v1 = vld [vmem:[#allocation6] sm:$0xff] }
  0x38   :  { %60 = vst.msk [vmem:[#allocation2 + $0x8] sm:$0xff] %vm58_vm0, %v324_v0  ;;  %59 = vst.msk [vmem:[#allocation2] sm:$0xff] %vm58_vm0, %v324_v0  ;;  %v66_v2 = vld [vmem:[#allocation6 + $0x8] sm:$0xff]  ;;  %v67_v3 = vld [vmem:[#allocation6 + $0x10] sm:$0xff]  ;;  %s325_s2 = smov [#allocation9]  }
  0x39   :  { %v210_v4 = vpack.c.bf16 %v66_v2, %v65_v1  ;;  %v68_v5 = vld [vmem:[#allocation6 + $0x18] sm:$0xff]  ;;  %v63_v6 = vld [vmem:[#allocation3] sm:$0xff]  ;;  %v192_v15 = vld [vmem:[#allocation8] ss:$0 sm:$0xff]  ;;  %s177_s22 = sshll.u32 %s325_s2, 4  ;;  %s178_s22 = int_to_ptr.vmem [resolvable:$true] %s177_s22 }
  0x3a   :  { %v214_v7 = vpack.c.bf16 %v68_v5, %v67_v3  ;;  %207 = vmatprep.mubr.msk.f32.mxu0 %vm69_vm1, %v63_v6  ;;  %v64_v8 = vld [vmem:[#allocation3 + $0x8] sm:$0xff]  ;;  %s291_s23 = scalar_lea.vmem %s178_s22, 256  ;;  %p296_p11 = scmp.lt.s32.totalorder %s178_s22, %s178_s22 }
  0x3b   :  { %211 = vmatprep.subr.bf16.mxu0 %v210_v4  ;;  %p292_p10 = scmp.ne.s32.totalorder %s178_s22, %s291_s23  ;;  %p297_p12 = scmp.lt.s32.totalorder %s291_s23, %s291_s23 }
  0x3c   :  { %213 = vmatpush3.bf16.msra.mxu0 %v210_v4 }
  0x3d   :  { %215 = vmatprep.subr.bf16.mxu0 %v214_v7  ;;  %p298_p13 = por %p297_p12, %p296_p11 }
  0x3f   :  { %v62_v9 = vld [vmem:[#allocation2 + $0x8] sm:$0xff]  ;;  %v61_v10 = vld [vmem:[#allocation2] sm:$0xff]  ;;  %p299_p0 = pnand %p298_p13, %p292_p10 }
  0x40   :  { %217 = vmatpush3.bf16.msra.mxu0 %v214_v7 }
  0x43   :  { %208 = vmatmul.mubr.msk.f32.vlgmr.msra.gmra.mrb[0].mxu0 %vm69_vm1, %v64_v8 }
 0x116   :  { %v209_v11 = vpop.f32.mrb[0].mxu0 }
 0x117   :  { %v152_v12 = vadd.f32 %v209_v11, %v62_v9  ;;  %v142_v13 = vpop.f32.mrb[1].mxu0 }
 0x118   :  { %v151_v14 = vadd.f32 %v142_v13, %v61_v10 }
 0x119   :  { %155 = vst.msk [vmem:[#allocation2 + $0x8] sm:$0xff] %vm58_vm0, %v152_v12 }
 0x11a   :  { %154 = vst.msk [vmem:[#allocation2] sm:$0xff] %vm58_vm0, %v151_v14 }
 0x120   :  { %v160_v16 = vld [vmem:[#allocation2 + $0x8] sm:$0xff] }
 0x121   :  { %v159_v17 = vld [vmem:[#allocation2] sm:$0xff]  ;;  %v169_v18 = vadd.f32 %v192_v15, %v160_v16 }
 0x122   :  { %v168_v19 = vadd.f32 %v192_v15, %v159_v17 }
 0x123   :  { %171 = vst.msk [vmem:[#allocation9 + $0x8] sm:$0xff] %vm58_vm0, %v169_v18 }
 0x124   :  { %170 = vst.msk [vmem:[#allocation9] sm:$0xff] %vm58_vm0, %v168_v19 }
 0x125   :  { %302 = shalt.err (!%p299_p0)
}
 0x126   :  { %s303_s28 = scalar_lea.hbm %s419_s3, 256 }
 0x127   :  { %p304_p1 = scmp.ne.s32.totalorder %s419_s3, %s303_s28  ;;  %p307_p2 = scmp.lt.u32.totalorder %s303_s28, %s419_s3 }
 0x129   :  { %p309_p3 = pnand %p307_p2, %p304_p1 }
 0x12b   :  { %312 = shalt.err (!%p309_p3)
}
 0x12c   :  { %183 = dma.vmem_to_hbm [thread:$0]  %s178_s22, 256, %s419_s3, [#allocation5], %s321_s24, %s321_s24, %s322_s25  }
 0x12d   :  { %317 = dma.done.wait [#allocation5], 256  }
 0x12e   :  { %318 = vsyncadd [#allocation5], 4294967040 }
 0x12f   :  { %187 = vsyncpa [#allocation4], 1 }
 0x130   :  { %188 = vsyncpa [#allocation7], 1 }
 0x131   :  { %189 = vsyncpa [#allocation5], 1 }

</bundles_post_ra>
